<compile_context>
chip_gen: v6e
topology: v6e:2x2x1
jax: 0.10.0
libtpu: 0.0.40
codegen_flags: <defaults>
</compile_context>

<pallas_src>
import functools
import math

import jax
import jax.numpy as jnp
import numpy as np
from jax.experimental import pallas as pl
from jax.experimental.pallas import tpu as pltpu

_EPS = 1e-5
_WEIGHT_KEYS = ("wq", "wk", "wv", "wo", "w1", "w2")


# --------------------------------------------------------------------------
# Generation-aware VMEM budget and Buffered(1) capability probe
# --------------------------------------------------------------------------
@functools.lru_cache(maxsize=None)
def _vmem_limit_bytes():
    """~3/4 of physical VMEM, capped at 100 MiB (v5e/v6e: 128 MiB, v7x: 64 MiB)."""
    cap = 128 * 1024 * 1024
    try:
        cap = int(pltpu.get_tpu_info().vmem_capacity_bytes)
    except Exception:
        pass
    return max(32 * 1024 * 1024, min(cap * 3 // 4, 100 * 1024 * 1024))


@functools.lru_cache(maxsize=None)
def _buffered_one_supported():
    """Probe whether pipeline_mode=pl.Buffered(1) lowers on this JAX/libtpu."""
    try:
        def _probe(w_ref, o_ref):
            o_ref[...] = w_ref[...] + 1.0

        out = pl.pallas_call(
            _probe,
            out_shape=jax.ShapeDtypeStruct((8, 128), jnp.float32),
            grid=(1,),
            in_specs=[pl.BlockSpec((8, 128), lambda i: (0, 0),
                                   pipeline_mode=pl.Buffered(1))],
            out_specs=pl.BlockSpec((8, 128), lambda i: (0, 0)),
        )(jnp.zeros((8, 128), jnp.float32))
        jax.block_until_ready(out)
        return True
    except Exception:
        return False


def _const_spec(shape):
    """BlockSpec for a grid-invariant operand (weights / LN params / biases):
    constant index map, single-buffered when supported (halves resident VMEM)."""
    index_map = lambda *args: (0,) * len(shape)
    if _buffered_one_supported():
        return pl.BlockSpec(shape, index_map, pipeline_mode=pl.Buffered(1))
    return pl.BlockSpec(shape, index_map)


# --------------------------------------------------------------------------
# Pass 1: LayerNorm1 + fused Q/K/V projection (scale folded into Q),
#         heads split on store into (B, nh, T, d) bf16 layout.
# --------------------------------------------------------------------------
def _ln_qkv_kernel(x_ref, g1_ref, b1_ref, wq_ref, wk_ref, wv_ref,
                   q_ref, k_ref, v_ref, *, num_heads, head_dim, scale):
    x = x_ref[0]                                         # (tq, H) f32
    mu = jnp.mean(x, axis=-1, keepdims=True)
    xc = x - mu
    var = jnp.mean(xc * xc, axis=-1, keepdims=True)
    x2 = xc * jax.lax.rsqrt(var + _EPS) * g1_ref[...] + b1_ref[...]
    x2 = x2.astype(jnp.bfloat16)                         # bf16 MXU feed

    q = (jnp.dot(x2, wq_ref[...], preferred_element_type=jnp.float32)
         * scale).astype(jnp.bfloat16)
    k = jnp.dot(x2, wk_ref[...],
                preferred_element_type=jnp.float32).astype(jnp.bfloat16)
    v = jnp.dot(x2, wv_ref[...],
                preferred_element_type=jnp.float32).astype(jnp.bfloat16)

    for h in range(num_heads):                           # static unroll
        sl = slice(h * head_dim, (h + 1) * head_dim)
        q_ref[0, h] = q[:, sl]
        k_ref[0, h] = k[:, sl]
        v_ref[0, h] = v[:, sl]


# --------------------------------------------------------------------------
# Pass 2: flash-style attention, `hb` heads per grid step, online softmax
#         over KV tiles, output written in (B, T, H) layout.
# --------------------------------------------------------------------------
def _flash_attn_kernel(q_ref, k_ref, v_ref, o_ref, m_sc, l_sc, acc_sc,
                       *, heads_per_block):
    kv = pl.program_id(3)

    @pl.when(kv == 0)
    def _():
        m_sc[...] = jnp.full_like(m_sc, -jnp.inf)
        l_sc[...] = jnp.zeros_like(l_sc)
        acc_sc[...] = jnp.zeros_like(acc_sc)

    q = q_ref[0]                                         # (hb, tq, d) bf16, pre-scaled
    k = k_ref[0]                                         # (hb, tk, d) bf16
    v = v_ref[0]                                         # (hb, tk, d) bf16

    # per-head scores, contracting on head_dim (no materialized k.T)
    s = jnp.einsum("hqd,hkd->hqk", q, k,
                   preferred_element_type=jnp.float32)   # (hb, tq, tk) f32

    m_prev = m_sc[...]
    m_new = jnp.maximum(m_prev, jnp.max(s, axis=-1, keepdims=True))
    alpha = jnp.exp(m_prev - m_new)
    p = jnp.exp(s - m_new)
    l_sc[...] = alpha * l_sc[...] + jnp.sum(p, axis=-1, keepdims=True)
    acc_sc[...] = alpha * acc_sc[...] + jnp.einsum(
        "hqk,hkd->hqd", p.astype(jnp.bfloat16), v,       # bf16 PV feed
        preferred_element_type=jnp.float32)
    m_sc[...] = m_new

    @pl.when(kv == pl.num_programs(3) - 1)
    def _():
        out = acc_sc[...] * pl.reciprocal(l_sc[...], approx=True)  # (hb, tq, d)
        # lay heads out along lanes -> one lane-dense (tq, hb*d) store
        o_ref[0] = jnp.concatenate(
            [out[h] for h in range(heads_per_block)], axis=-1
        ).astype(o_ref.dtype)


# --------------------------------------------------------------------------
# Pass 3 (fused): attention output projection + residual + LayerNorm2 +
#                 F-chunked FFN with f32 accumulator + residual.
# --------------------------------------------------------------------------
def _proj_ffn_kernel(a_ref, wo_ref, x_ref, g2_ref, b2_ref,
                     w1_ref, bf1_ref, w2_ref, bf2_ref, o_ref,
                     y1_sc, x2_sc, acc_sc):
    f = pl.program_id(2)

    @pl.when(f == 0)
    def _():
        # full-H contraction for the output projection, then first residual
        y1 = x_ref[0] + jnp.dot(a_ref[0], wo_ref[...],
                                preferred_element_type=jnp.float32)
        y1_sc[...] = y1
        # LayerNorm 2
        mu = jnp.mean(y1, axis=-1, keepdims=True)
        yc = y1 - mu
        var = jnp.mean(yc * yc, axis=-1, keepdims=True)
        x2_sc[...] = (yc * jax.lax.rsqrt(var + _EPS) * g2_ref[...]
                      + b2_ref[...]).astype(jnp.bfloat16)
        acc_sc[...] = jnp.zeros_like(acc_sc)

    h1 = jnp.dot(x2_sc[...], w1_ref[...],
                 preferred_element_type=jnp.float32) + bf1_ref[...]
    h1 = jnp.maximum(h1, 0.0).astype(jnp.bfloat16)
    acc_sc[...] += jnp.dot(h1, w2_ref[...], preferred_element_type=jnp.float32)

    @pl.when(f == pl.num_programs(2) - 1)
    def _():
        o_ref[0] = (y1_sc[...] + acc_sc[...] + bf2_ref[...]).astype(o_ref.dtype)


# --------------------------------------------------------------------------
# Wrapper
# --------------------------------------------------------------------------
def _pick_heads_per_block(num_heads, head_dim):
    """Smallest head group so the attention-output store is lane-dense
    (hb*d a multiple of 128), falling back to all heads (hb*d == H)."""
    for hb in range(1, num_heads + 1):
        if num_heads % hb == 0 and (hb * head_dim) % 128 == 0:
            return hb
    return num_heads


def encoder_layer_pallas(x, params, *, num_heads, tq=256, tk=512, tf=512):
    B, T, H = x.shape
    F = params["w1"].shape[1]
    assert H % num_heads == 0
    d = H // num_heads
    tq = min(tq, T)
    tk = min(tk, T)
    tf = min(tf, F)
    assert T % tq == 0 and T % tk == 0 and F % tf == 0
    nTq, nTk, nF = T // tq, T // tk, F // tf
    scale = d ** (-0.5)
    hb = _pick_heads_per_block(num_heads, d)
    nHG = num_heads // hb
    vmem_limit = _vmem_limit_bytes()

    # bf16 weights: half the HBM/VMEM bytes; every matmul accumulates in f32.
    wq, wk, wv, wo, w1, w2 = (params[n].astype(jnp.bfloat16)
                              for n in _WEIGHT_KEYS)
    g1, b1 = params["g1"], params["b1"]
    g2, b2 = params["g2"], params["b2"]
    bf1, bf2 = params["bf1"], params["bf2"]

    # ---- pass 1: LN1 + QKV projection ----
    qkv_shape = jax.ShapeDtypeStruct((B, num_heads, T, d), jnp.bfloat16)
    qkv_spec = pl.BlockSpec((1, num_heads, tq, d), lambda b, i: (b, 0, i, 0))
    q, k, v = pl.pallas_call(
        functools.partial(_ln_qkv_kernel, num_heads=num_heads, head_dim=d,
                          scale=scale),
        out_shape=(qkv_shape, qkv_shape, qkv_shape),
        grid_spec=pltpu.PrefetchScalarGridSpec(
            num_scalar_prefetch=0,
            grid=(B, nTq),
            in_specs=[
                pl.BlockSpec((1, tq, H), lambda b, i: (b, i, 0)),     # x
                _const_spec((1, H)), _const_spec((1, H)),             # ln1 g,b
                _const_spec((H, H)), _const_spec((H, H)), _const_spec((H, H)),
            ],
            out_specs=(qkv_spec, qkv_spec, qkv_spec),
        ),
        compiler_params=pltpu.CompilerParams(
            dimension_semantics=("parallel", "parallel"),
            vmem_limit_bytes=vmem_limit),
    )(x, g1, b1, wq, wk, wv)

    # ---- pass 2: flash attention (head-grouped), output in (B, T, H) ----
    attn = pl.pallas_call(
        functools.partial(_flash_attn_kernel, heads_per_block=hb),
        out_shape=jax.ShapeDtypeStruct((B, T, H), jnp.bfloat16),
        grid_spec=pltpu.PrefetchScalarGridSpec(
            num_scalar_prefetch=0,
            grid=(B, nHG, nTq, nTk),
            in_specs=[
                pl.BlockSpec((1, hb, tq, d), lambda b, g, i, j: (b, g, i, 0)),
                pl.BlockSpec((1, hb, tk, d), lambda b, g, i, j: (b, g, j, 0)),
                pl.BlockSpec((1, hb, tk, d), lambda b, g, i, j: (b, g, j, 0)),
            ],
            out_specs=pl.BlockSpec((1, tq, hb * d),
                                   lambda b, g, i, j: (b, i, g)),
            scratch_shapes=[
                pltpu.VMEM((hb, tq, 1), jnp.float32),   # running max
                pltpu.VMEM((hb, tq, 1), jnp.float32),   # running denom
                pltpu.VMEM((hb, tq, d), jnp.float32),   # output accumulator
            ],
        ),
        compiler_params=pltpu.CompilerParams(
            dimension_semantics=("parallel", "parallel", "parallel",
                                 "arbitrary"),
            vmem_limit_bytes=vmem_limit),
    )(q, k, v)

    # ---- pass 3: fused output projection + residual + LN2 + FFN + residual ----
    out = pl.pallas_call(
        _proj_ffn_kernel,
        out_shape=jax.ShapeDtypeStruct((B, T, H), jnp.float32),
        grid_spec=pltpu.PrefetchScalarGridSpec(
            num_scalar_prefetch=0,
            grid=(B, nTq, nF),
            in_specs=[
                pl.BlockSpec((1, tq, H), lambda b, i, f: (b, i, 0)),  # attn
                _const_spec((H, H)),                                   # wo
                pl.BlockSpec((1, tq, H), lambda b, i, f: (b, i, 0)),  # resid x
                _const_spec((1, H)), _const_spec((1, H)),              # ln2 g,b
                pl.BlockSpec((H, tf), lambda b, i, f: (0, f)),         # w1 chunk
                pl.BlockSpec((1, tf), lambda b, i, f: (0, f)),         # bf1 chunk
                pl.BlockSpec((tf, H), lambda b, i, f: (f, 0)),         # w2 chunk
                _const_spec((1, H)),                                   # bf2
            ],
            out_specs=pl.BlockSpec((1, tq, H), lambda b, i, f: (b, i, 0)),
            scratch_shapes=[
                pltpu.VMEM((tq, H), jnp.float32),    # y1 = x + attn @ wo
                pltpu.VMEM((tq, H), jnp.bfloat16),   # LN2 output (bf16 feed)
                pltpu.VMEM((tq, H), jnp.float32),    # FFN accumulator
            ],
        ),
        compiler_params=pltpu.CompilerParams(
            dimension_semantics=("parallel", "parallel", "arbitrary"),
            vmem_limit_bytes=vmem_limit),
    )(attn, wo, x, g2, b2, w1, bf1, w2, bf2)

    return out


# --------------------------------------------------------------------------
# Parameters (weights stored (in_features, out_features) so y = x @ W + b)
# --------------------------------------------------------------------------
def _xavier_uniform(key, fan_in, fan_out):
    bound = math.sqrt(6.0 / (fan_in + fan_out))
    return jax.random.uniform(
        key, (fan_in, fan_out), jnp.float32, minval=-bound, maxval=bound)


def make_params(key, hidden_size, filter_size):
    ks = jax.random.split(key, 6)
    H, F = hidden_size, filter_size
    return {
        "g1": jnp.ones((1, H), jnp.float32),
        "b1": jnp.zeros((1, H), jnp.float32),
        "g2": jnp.ones((1, H), jnp.float32),
        "b2": jnp.zeros((1, H), jnp.float32),
        "wq": _xavier_uniform(ks[0], H, H),
        "wk": _xavier_uniform(ks[1], H, H),
        "wv": _xavier_uniform(ks[2], H, H),
        "wo": _xavier_uniform(ks[3], H, H),
        "w1": _xavier_uniform(ks[4], H, F),
        "bf1": jnp.zeros((1, F), jnp.float32),
        "w2": _xavier_uniform(ks[5], F, H),
        "bf2": jnp.zeros((1, H), jnp.float32),
    }


def encoder_layer_reference(x, params, *, num_heads):
    """Pure-JAX f32 reference reproducing the PyTorch forward (eval mode)."""
    B, T, H = x.shape
    d = H // num_heads

    def ln(v, g, b):
        mu = jnp.mean(v, axis=-1, keepdims=True)
        var = jnp.mean((v - mu) ** 2, axis=-1, keepdims=True)
        return (v - mu) / jnp.sqrt(var + _EPS) * g + b

    x2 = ln(x, params["g1"][0], params["b1"][0])
    q = (x2 @ params["wq"]).reshape(B, T, num_heads, d).transpose(0, 2, 1, 3)
    k = (x2 @ params["wk"]).reshape(B, T, num_heads, d).transpose(0, 2, 1, 3)
    v = (x2 @ params["wv"]).reshape(B, T, num_heads, d).transpose(0, 2, 1, 3)
    scores = (q @ jnp.swapaxes(k, -2, -1)) * (d ** -0.5)
    attn = jax.nn.softmax(scores, axis=-1)
    out = (attn @ v).transpose(0, 2, 1, 3).reshape(B, T, H)
    x = x + out @ params["wo"]
    x2 = ln(x, params["g2"][0], params["b2"][0])
    ffn = jnp.maximum(x2 @ params["w1"] + params["bf1"][0], 0.0) @ params["w2"] \
        + params["bf2"][0]
    return x + ffn


if __name__ == "__main__":
    B, T, H, F, NH = 2, 32, 32, 256, 4
    key = jax.random.PRNGKey(0)
    k_x, k_p = jax.random.split(key)
    x = jax.random.normal(k_x, (B, T, H), jnp.float32)
    params = make_params(k_p, H, F)

    # tq=tk=16 (2 query tiles, 2 KV tiles) and tf=128 (2 filter chunks) so the
    # multi-tile, online-softmax, and F-accumulation paths are all exercised.
    out = encoder_layer_pallas(x, params, num_heads=NH, tq=16, tk=16, tf=128)
    out = jax.block_until_ready(out)

    # Reference uses the same bf16-rounded weights (upcast to f32) so the
    # comparison isolates the kernel's bf16 activation feeds / accumulation
    # order; tolerance is sized for bf16 matmul inputs with f32 accumulation.
    ref_params = {k_: (v.astype(jnp.bfloat16).astype(jnp.float32)
                       if k_ in _WEIGHT_KEYS else v)
                  for k_, v in params.items()}
    ref = encoder_layer_reference(x, ref_params, num_heads=NH)
    np.testing.assert_allclose(np.asarray(out), np.asarray(ref),
                               rtol=5e-2, atol=5e-2)
    print("KERNEL_OK")
</pallas_src>

<mosaic_0001>
module attributes {stable_mosaic.version = 11 : i64} {
  func.func @_probe(%arg0: i32, %arg1: memref<8x128xf32, #tpu.memory_space<vmem>>, %arg2: memref<8x128xf32, #tpu.memory_space<vmem>>) attributes {dimension_semantics = [#tpu.dimension_semantics<arbitrary>], iteration_bounds = array<i64: 1>, scalar_prefetch = 0 : i64, scratch_operands = 0 : i64, tpu.core_type = #tpu.core_type<tc>, window_params = [{pipeline_mode = #tpu.pipeline_mode<synchronous>, transform_indices = @transform_0, window_bounds = array<i64: 8, 128>}, {pipeline_mode = #tpu.pipeline_mode<synchronous>, transform_indices = @transform_1, window_bounds = array<i64: 8, 128>}]} {
    %c0 = arith.constant 0 : index
    %c0_0 = arith.constant 0 : index
    %0 = vector.load %arg1[%c0, %c0_0] : memref<8x128xf32, #tpu.memory_space<vmem>>, vector<8x128xf32>
    %cst = arith.constant 1.000000e+00 : f32
    %1 = vector.broadcast %cst : f32 to vector<8x128xf32>
    %2 = arith.addf %0, %1 : vector<8x128xf32>
    %c0_1 = arith.constant 0 : index
    %c0_2 = arith.constant 0 : index
    %3 = vector.load %arg2[%c0_1, %c0_2] : memref<8x128xf32, #tpu.memory_space<vmem>>, vector<8x128xf32>
    tpu.vector_store %arg2[%c0_1, %c0_2], %2 {strides = array<i32>} : memref<8x128xf32, #tpu.memory_space<vmem>>, vector<8x128xf32>,
    return
  }
  func.func @transform_0(%arg0: i32) -> (i32, i32) {
    %c0_i32 = arith.constant 0 : i32
    %c0_i32_0 = arith.constant 0 : i32
    %c0_i32_1 = arith.constant 0 : i32
    return %c0_i32, %c0_i32_0 : i32, i32
  }
  func.func @transform_1(%arg0: i32) -> (i32, i32) {
    %c0_i32 = arith.constant 0 : i32
    %c0_i32_0 = arith.constant 0 : i32
    %c0_i32_1 = arith.constant 0 : i32
    return %c0_i32, %c0_i32_0 : i32, i32
  }
}

module attributes {stable_mosaic.version = 11 : i64} {
  func.func @_ln_qkv_kernel(%arg0: i32, %arg1: i32, %arg2: memref<1x16x32xf32, #tpu.memory_space<vmem>>, %arg3: memref<1x32xf32, #tpu.memory_space<vmem>>, %arg4: memref<1x32xf32, #tpu.memory_space<vmem>>, %arg5: memref<32x32xbf16, #tpu.memory_space<vmem>>, %arg6: memref<32x32xbf16, #tpu.memory_space<vmem>>, %arg7: memref<32x32xbf16, #tpu.memory_space<vmem>>, %arg8: memref<1x4x16x8xbf16, #tpu.memory_space<vmem>>, %arg9: memref<1x4x16x8xbf16, #tpu.memory_space<vmem>>, %arg10: memref<1x4x16x8xbf16, #tpu.memory_space<vmem>>) attributes {dimension_semantics = [#tpu.dimension_semantics<parallel>, #tpu.dimension_semantics<parallel>], iteration_bounds = array<i64: 2, 2>, scalar_prefetch = 0 : i64, scratch_operands = 0 : i64, tpu.core_type = #tpu.core_type<tc>, window_params = [{transform_indices = @transform_0, window_bounds = array<i64: 1, 16, 32>}, {pipeline_mode = #tpu.pipeline_mode<synchronous>, transform_indices = @transform_1, window_bounds = array<i64: 1, 32>}, {pipeline_mode = #tpu.pipeline_mode<synchronous>, transform_indices = @transform_2, window_bounds = array<i64: 1, 32>}, {pipeline_mode = #tpu.pipeline_mode<synchronous>, transform_indices = @transform_3, window_bounds = array<i64: 32, 32>}, {pipeline_mode = #tpu.pipeline_mode<synchronous>, transform_indices = @transform_4, window_bounds = array<i64: 32, 32>}, {pipeline_mode = #tpu.pipeline_mode<synchronous>, transform_indices = @transform_5, window_bounds = array<i64: 32, 32>}, {transform_indices = @transform_6, window_bounds = array<i64: 1, 4, 16, 8>}, {transform_indices = @transform_7, window_bounds = array<i64: 1, 4, 16, 8>}, {transform_indices = @transform_8, window_bounds = array<i64: 1, 4, 16, 8>}]} {
    %c0 = arith.constant 0 : index
    %c0_0 = arith.constant 0 : index
    %c0_1 = arith.constant 0 : index
    %0 = vector.load %arg2[%c0, %c0_0, %c0_1] : memref<1x16x32xf32, #tpu.memory_space<vmem>>, vector<1x16x32xf32>
    %1 = vector.shape_cast %0 : vector<1x16x32xf32> to vector<16x32xf32>
    %cst = arith.constant dense<0.000000e+00> : vector<16xf32>
    %2 = vector.multi_reduction <add>, %1, %cst [1] : vector<16x32xf32> to vector<16xf32>
    %3 = vector.shape_cast %2 : vector<16xf32> to vector<16x1xf32>
    %cst_2 = arith.constant 3.200000e+01 : f32
    %4 = vector.broadcast %cst_2 : f32 to vector<16x1xf32>
    %5 = arith.divf %3, %4 : vector<16x1xf32>
    %6 = vector.broadcast %5 : vector<16x1xf32> to vector<16x32xf32>
    %7 = arith.subf %1, %6 : vector<16x32xf32>
    %8 = arith.mulf %7, %7 : vector<16x32xf32>
    %cst_3 = arith.constant dense<0.000000e+00> : vector<16xf32>
    %9 = vector.multi_reduction <add>, %8, %cst_3 [1] : vector<16x32xf32> to vector<16xf32>
    %10 = vector.shape_cast %9 : vector<16xf32> to vector<16x1xf32>
    %cst_4 = arith.constant 3.200000e+01 : f32
    %11 = vector.broadcast %cst_4 : f32 to vector<16x1xf32>
    %12 = arith.divf %10, %11 : vector<16x1xf32>
    %cst_5 = arith.constant 9.99999974E-6 : f32
    %13 = vector.broadcast %cst_5 : f32 to vector<16x1xf32>
    %14 = arith.addf %12, %13 : vector<16x1xf32>
    %15 = math.rsqrt %14 : vector<16x1xf32>
    %16 = vector.broadcast %15 : vector<16x1xf32> to vector<16x32xf32>
    %17 = arith.mulf %7, %16 : vector<16x32xf32>
    %c0_6 = arith.constant 0 : index
    %c0_7 = arith.constant 0 : index
    %18 = vector.load %arg3[%c0_6, %c0_7] : memref<1x32xf32, #tpu.memory_space<vmem>>, vector<1x32xf32>
    %19 = vector.broadcast %18 : vector<1x32xf32> to vector<16x32xf32>
    %20 = arith.mulf %17, %19 : vector<16x32xf32>
    %c0_8 = arith.constant 0 : index
    %c0_9 = arith.constant 0 : index
    %21 = vector.load %arg4[%c0_8, %c0_9] : memref<1x32xf32, #tpu.memory_space<vmem>>, vector<1x32xf32>
    %22 = vector.broadcast %21 : vector<1x32xf32> to vector<16x32xf32>
    %23 = arith.addf %20, %22 : vector<16x32xf32>
    %24 = arith.truncf %23 : vector<16x32xf32> to vector<16x32xbf16>
    %c0_10 = arith.constant 0 : index
    %c0_11 = arith.constant 0 : index
    %25 = vector.load %arg5[%c0_10, %c0_11] : memref<32x32xbf16, #tpu.memory_space<vmem>>, vector<32x32xbf16>
    %cst_12 = arith.constant dense<0.000000e+00> : vector<16x32xf32>
    %26 = tpu.matmul %24, %25, %cst_12 {dimension_numbers = #tpu.dot_dimension_numbers<[1], [0], [0], [1], [0, 0, 1, 1], [], []>} : vector<16x32xbf16>, vector<32x32xbf16>, vector<16x32xf32> -> vector<16x32xf32>
    %cst_13 = arith.constant 0.353553385 : f32
    %27 = vector.broadcast %cst_13 : f32 to vector<16x32xf32>
    %28 = arith.mulf %26, %27 : vector<16x32xf32>
    %29 = arith.truncf %28 : vector<16x32xf32> to vector<16x32xbf16>
    %c0_14 = arith.constant 0 : index
    %c0_15 = arith.constant 0 : index
    %30 = vector.load %arg6[%c0_14, %c0_15] : memref<32x32xbf16, #tpu.memory_space<vmem>>, vector<32x32xbf16>
    %cst_16 = arith.constant dense<0.000000e+00> : vector<16x32xf32>
    %31 = tpu.matmul %24, %30, %cst_16 {dimension_numbers = #tpu.dot_dimension_numbers<[1], [0], [0], [1], [0, 0, 1, 1], [], []>} : vector<16x32xbf16>, vector<32x32xbf16>, vector<16x32xf32> -> vector<16x32xf32>
    %32 = arith.truncf %31 : vector<16x32xf32> to vector<16x32xbf16>
    %c0_17 = arith.constant 0 : index
    %c0_18 = arith.constant 0 : index
    %33 = vector.load %arg7[%c0_17, %c0_18] : memref<32x32xbf16, #tpu.memory_space<vmem>>, vector<32x32xbf16>
    %cst_19 = arith.constant dense<0.000000e+00> : vector<16x32xf32>
    %34 = tpu.matmul %24, %33, %cst_19 {dimension_numbers = #tpu.dot_dimension_numbers<[1], [0], [0], [1], [0, 0, 1, 1], [], []>} : vector<16x32xbf16>, vector<32x32xbf16>, vector<16x32xf32> -> vector<16x32xf32>
    %35 = arith.truncf %34 : vector<16x32xf32> to vector<16x32xbf16>
    %36 = vector.extract_strided_slice %29 {offsets = [0, 0], sizes = [16, 8], strides = [1, 1]} : vector<16x32xbf16> to vector<16x8xbf16>
    %c0_20 = arith.constant 0 : index
    %c0_21 = arith.constant 0 : index
    %c0_22 = arith.constant 0 : index
    %c0_23 = arith.constant 0 : index
    %37 = vector.load %arg8[%c0_20, %c0_21, %c0_22, %c0_23] : memref<1x4x16x8xbf16, #tpu.memory_space<vmem>>, vector<1x1x16x8xbf16>
    %38 = vector.shape_cast %37 : vector<1x1x16x8xbf16> to vector<16x8xbf16>
    %39 = vector.shape_cast %36 : vector<16x8xbf16> to vector<1x1x16x8xbf16>
    tpu.vector_store %arg8[%c0_20, %c0_21, %c0_22, %c0_23], %39 {strides = array<i32>} : memref<1x4x16x8xbf16, #tpu.memory_space<vmem>>, vector<1x1x16x8xbf16>,
    %40 = vector.extract_strided_slice %32 {offsets = [0, 0], sizes = [16, 8], strides = [1, 1]} : vector<16x32xbf16> to vector<16x8xbf16>
    %c0_24 = arith.constant 0 : index
    %c0_25 = arith.constant 0 : index
    %c0_26 = arith.constant 0 : index
    %c0_27 = arith.constant 0 : index
    %41 = vector.load %arg9[%c0_24, %c0_25, %c0_26, %c0_27] : memref<1x4x16x8xbf16, #tpu.memory_space<vmem>>, vector<1x1x16x8xbf16>
    %42 = vector.shape_cast %41 : vector<1x1x16x8xbf16> to vector<16x8xbf16>
    %43 = vector.shape_cast %40 : vector<16x8xbf16> to vector<1x1x16x8xbf16>
    tpu.vector_store %arg9[%c0_24, %c0_25, %c0_26, %c0_27], %43 {strides = array<i32>} : memref<1x4x16x8xbf16, #tpu.memory_space<vmem>>, vector<1x1x16x8xbf16>,
    %44 = vector.extract_strided_slice %35 {offsets = [0, 0], sizes = [16, 8], strides = [1, 1]} : vector<16x32xbf16> to vector<16x8xbf16>
    %c0_28 = arith.constant 0 : index
    %c0_29 = arith.constant 0 : index
    %c0_30 = arith.constant 0 : index
    %c0_31 = arith.constant 0 : index
    %45 = vector.load %arg10[%c0_28, %c0_29, %c0_30, %c0_31] : memref<1x4x16x8xbf16, #tpu.memory_space<vmem>>, vector<1x1x16x8xbf16>
    %46 = vector.shape_cast %45 : vector<1x1x16x8xbf16> to vector<16x8xbf16>
    %47 = vector.shape_cast %44 : vector<16x8xbf16> to vector<1x1x16x8xbf16>
    tpu.vector_store %arg10[%c0_28, %c0_29, %c0_30, %c0_31], %47 {strides = array<i32>} : memref<1x4x16x8xbf16, #tpu.memory_space<vmem>>, vector<1x1x16x8xbf16>,
    %48 = vector.extract_strided_slice %29 {offsets = [0, 8], sizes = [16, 8], strides = [1, 1]} : vector<16x32xbf16> to vector<16x8xbf16>
    %c0_32 = arith.constant 0 : index
    %c1 = arith.constant 1 : index
    %c0_33 = arith.constant 0 : index
    %c0_34 = arith.constant 0 : index
    %49 = vector.load %arg8[%c0_32, %c1, %c0_33, %c0_34] : memref<1x4x16x8xbf16, #tpu.memory_space<vmem>>, vector<1x1x16x8xbf16>
    %50 = vector.shape_cast %49 : vector<1x1x16x8xbf16> to vector<16x8xbf16>
    %51 = vector.shape_cast %48 : vector<16x8xbf16> to vector<1x1x16x8xbf16>
    tpu.vector_store %arg8[%c0_32, %c1, %c0_33, %c0_34], %51 {strides = array<i32>} : memref<1x4x16x8xbf16, #tpu.memory_space<vmem>>, vector<1x1x16x8xbf16>,
    %52 = vector.extract_strided_slice %32 {offsets = [0, 8], sizes = [16, 8], strides = [1, 1]} : vector<16x32xbf16> to vector<16x8xbf16>
    %c0_35 = arith.constant 0 : index
    %c1_36 = arith.constant 1 : index
    %c0_37 = arith.constant 0 : index
    %c0_38 = arith.constant 0 : index
    %53 = vector.load %arg9[%c0_35, %c1_36, %c0_37, %c0_38] : memref<1x4x16x8xbf16, #tpu.memory_space<vmem>>, vector<1x1x16x8xbf16>
    %54 = vector.shape_cast %53 : vector<1x1x16x8xbf16> to vector<16x8xbf16>
    %55 = vector.shape_cast %52 : vector<16x8xbf16> to vector<1x1x16x8xbf16>
    tpu.vector_store %arg9[%c0_35, %c1_36, %c0_37, %c0_38], %55 {strides = array<i32>} : memref<1x4x16x8xbf16, #tpu.memory_space<vmem>>, vector<1x1x16x8xbf16>,
    %56 = vector.extract_strided_slice %35 {offsets = [0, 8], sizes = [16, 8], strides = [1, 1]} : vector<16x32xbf16> to vector<16x8xbf16>
    %c0_39 = arith.constant 0 : index
    %c1_40 = arith.constant 1 : index
    %c0_41 = arith.constant 0 : index
    %c0_42 = arith.constant 0 : index
    %57 = vector.load %arg10[%c0_39, %c1_40, %c0_41, %c0_42] : memref<1x4x16x8xbf16, #tpu.memory_space<vmem>>, vector<1x1x16x8xbf16>
    %58 = vector.shape_cast %57 : vector<1x1x16x8xbf16> to vector<16x8xbf16>
    %59 = vector.shape_cast %56 : vector<16x8xbf16> to vector<1x1x16x8xbf16>
    tpu.vector_store %arg10[%c0_39, %c1_40, %c0_41, %c0_42], %59 {strides = array<i32>} : memref<1x4x16x8xbf16, #tpu.memory_space<vmem>>, vector<1x1x16x8xbf16>,
    %60 = vector.extract_strided_slice %29 {offsets = [0, 16], sizes = [16, 8], strides = [1, 1]} : vector<16x32xbf16> to vector<16x8xbf16>
    %c0_43 = arith.constant 0 : index
    %c2 = arith.constant 2 : index
    %c0_44 = arith.constant 0 : index
    %c0_45 = arith.constant 0 : index
    %61 = vector.load %arg8[%c0_43, %c2, %c0_44, %c0_45] : memref<1x4x16x8xbf16, #tpu.memory_space<vmem>>, vector<1x1x16x8xbf16>
    %62 = vector.shape_cast %61 : vector<1x1x16x8xbf16> to vector<16x8xbf16>
    %63 = vector.shape_cast %60 : vector<16x8xbf16> to vector<1x1x16x8xbf16>
    tpu.vector_store %arg8[%c0_43, %c2, %c0_44, %c0_45], %63 {strides = array<i32>} : memref<1x4x16x8xbf16, #tpu.memory_space<vmem>>, vector<1x1x16x8xbf16>,
    %64 = vector.extract_strided_slice %32 {offsets = [0, 16], sizes = [16, 8], strides = [1, 1]} : vector<16x32xbf16> to vector<16x8xbf16>
    %c0_46 = arith.constant 0 : index
    %c2_47 = arith.constant 2 : index
    %c0_48 = arith.constant 0 : index
    %c0_49 = arith.constant 0 : index
    %65 = vector.load %arg9[%c0_46, %c2_47, %c0_48, %c0_49] : memref<1x4x16x8xbf16, #tpu.memory_space<vmem>>, vector<1x1x16x8xbf16>
    %66 = vector.shape_cast %65 : vector<1x1x16x8xbf16> to vector<16x8xbf16>
    %67 = vector.shape_cast %64 : vector<16x8xbf16> to vector<1x1x16x8xbf16>
    tpu.vector_store %arg9[%c0_46, %c2_47, %c0_48, %c0_49], %67 {strides = array<i32>} : memref<1x4x16x8xbf16, #tpu.memory_space<vmem>>, vector<1x1x16x8xbf16>,
    %68 = vector.extract_strided_slice %35 {offsets = [0, 16], sizes = [16, 8], strides = [1, 1]} : vector<16x32xbf16> to vector<16x8xbf16>
    %c0_50 = arith.constant 0 : index
    %c2_51 = arith.constant 2 : index
    %c0_52 = arith.constant 0 : index
    %c0_53 = arith.constant 0 : index
    %69 = vector.load %arg10[%c0_50, %c2_51, %c0_52, %c0_53] : memref<1x4x16x8xbf16, #tpu.memory_space<vmem>>, vector<1x1x16x8xbf16>
    %70 = vector.shape_cast %69 : vector<1x1x16x8xbf16> to vector<16x8xbf16>
    %71 = vector.shape_cast %68 : vector<16x8xbf16> to vector<1x1x16x8xbf16>
    tpu.vector_store %arg10[%c0_50, %c2_51, %c0_52, %c0_53], %71 {strides = array<i32>} : memref<1x4x16x8xbf16, #tpu.memory_space<vmem>>, vector<1x1x16x8xbf16>,
    %72 = vector.extract_strided_slice %29 {offsets = [0, 24], sizes = [16, 8], strides = [1, 1]} : vector<16x32xbf16> to vector<16x8xbf16>
    %c0_54 = arith.constant 0 : index
    %c3 = arith.constant 3 : index
    %c0_55 = arith.constant 0 : index
    %c0_56 = arith.constant 0 : index
    %73 = vector.load %arg8[%c0_54, %c3, %c0_55, %c0_56] : memref<1x4x16x8xbf16, #tpu.memory_space<vmem>>, vector<1x1x16x8xbf16>
    %74 = vector.shape_cast %73 : vector<1x1x16x8xbf16> to vector<16x8xbf16>
    %75 = vector.shape_cast %72 : vector<16x8xbf16> to vector<1x1x16x8xbf16>
    tpu.vector_store %arg8[%c0_54, %c3, %c0_55, %c0_56], %75 {strides = array<i32>} : memref<1x4x16x8xbf16, #tpu.memory_space<vmem>>, vector<1x1x16x8xbf16>,
    %76 = vector.extract_strided_slice %32 {offsets = [0, 24], sizes = [16, 8], strides = [1, 1]} : vector<16x32xbf16> to vector<16x8xbf16>
    %c0_57 = arith.constant 0 : index
    %c3_58 = arith.constant 3 : index
    %c0_59 = arith.constant 0 : index
    %c0_60 = arith.constant 0 : index
    %77 = vector.load %arg9[%c0_57, %c3_58, %c0_59, %c0_60] : memref<1x4x16x8xbf16, #tpu.memory_space<vmem>>, vector<1x1x16x8xbf16>
    %78 = vector.shape_cast %77 : vector<1x1x16x8xbf16> to vector<16x8xbf16>
    %79 = vector.shape_cast %76 : vector<16x8xbf16> to vector<1x1x16x8xbf16>
    tpu.vector_store %arg9[%c0_57, %c3_58, %c0_59, %c0_60], %79 {strides = array<i32>} : memref<1x4x16x8xbf16, #tpu.memory_space<vmem>>, vector<1x1x16x8xbf16>,
    %80 = vector.extract_strided_slice %35 {offsets = [0, 24], sizes = [16, 8], strides = [1, 1]} : vector<16x32xbf16> to vector<16x8xbf16>
    %c0_61 = arith.constant 0 : index
    %c3_62 = arith.constant 3 : index
    %c0_63 = arith.constant 0 : index
    %c0_64 = arith.constant 0 : index
    %81 = vector.load %arg10[%c0_61, %c3_62, %c0_63, %c0_64] : memref<1x4x16x8xbf16, #tpu.memory_space<vmem>>, vector<1x1x16x8xbf16>
    %82 = vector.shape_cast %81 : vector<1x1x16x8xbf16> to vector<16x8xbf16>
    %83 = vector.shape_cast %80 : vector<16x8xbf16> to vector<1x1x16x8xbf16>
    tpu.vector_store %arg10[%c0_61, %c3_62, %c0_63, %c0_64], %83 {strides = array<i32>} : memref<1x4x16x8xbf16, #tpu.memory_space<vmem>>, vector<1x1x16x8xbf16>,
    return
  }
  func.func @transform_0(%arg0: i32, %arg1: i32) -> (i32, i32, i32) {
    %c0_i32 = arith.constant 0 : i32
    %c0_i32_0 = arith.constant 0 : i32
    return %arg0, %arg1, %c0_i32 : i32, i32, i32
  }
  func.func @transform_1(%arg0: i32, %arg1: i32) -> (i32, i32) {
    %c0_i32 = arith.constant 0 : i32
    %c0_i32_0 = arith.constant 0 : i32
    %c0_i32_1 = arith.constant 0 : i32
    return %c0_i32, %c0_i32_0 : i32, i32
  }
  func.func @transform_2(%arg0: i32, %arg1: i32) -> (i32, i32) {
    %c0_i32 = arith.constant 0 : i32
    %c0_i32_0 = arith.constant 0 : i32
    %c0_i32_1 = arith.constant 0 : i32
    return %c0_i32, %c0_i32_0 : i32, i32
  }
  func.func @transform_3(%arg0: i32, %arg1: i32) -> (i32, i32) {
    %c0_i32 = arith.constant 0 : i32
    %c0_i32_0 = arith.constant 0 : i32
    %c0_i32_1 = arith.constant 0 : i32
    return %c0_i32, %c0_i32_0 : i32, i32
  }
  func.func @transform_4(%arg0: i32, %arg1: i32) -> (i32, i32) {
    %c0_i32 = arith.constant 0 : i32
    %c0_i32_0 = arith.constant 0 : i32
    %c0_i32_1 = arith.constant 0 : i32
    return %c0_i32, %c0_i32_0 : i32, i32
  }
  func.func @transform_5(%arg0: i32, %arg1: i32) -> (i32, i32) {
    %c0_i32 = arith.constant 0 : i32
    %c0_i32_0 = arith.constant 0 : i32
    %c0_i32_1 = arith.constant 0 : i32
    return %c0_i32, %c0_i32_0 : i32, i32
  }
  func.func @transform_6(%arg0: i32, %arg1: i32) -> (i32, i32, i32, i32) {
    %c0_i32 = arith.constant 0 : i32
    %c0_i32_0 = arith.constant 0 : i32
    %c0_i32_1 = arith.constant 0 : i32
    return %arg0, %c0_i32, %arg1, %c0_i32_0 : i32, i32, i32, i32
  }
  func.func @transform_7(%arg0: i32, %arg1: i32) -> (i32, i32, i32, i32) {
    %c0_i32 = arith.constant 0 : i32
    %c0_i32_0 = arith.constant 0 : i32
    %c0_i32_1 = arith.constant 0 : i32
    return %arg0, %c0_i32, %arg1, %c0_i32_0 : i32, i32, i32, i32
  }
  func.func @transform_8(%arg0: i32, %arg1: i32) -> (i32, i32, i32, i32) {
    %c0_i32 = arith.constant 0 : i32
    %c0_i32_0 = arith.constant 0 : i32
    %c0_i32_1 = arith.constant 0 : i32
    return %arg0, %c0_i32, %arg1, %c0_i32_0 : i32, i32, i32, i32
  }
}

</mosaic_0001>

<bundles_post_ra>
// kernel: tpu_custom_call.1
= control target key start
LH: loop header
LB: loop body
LE: loop exit
PB: predicated region body
PF: predicated region fallthrough
CT: control target
= control target key end

     0   :  { %6 = vsyncpa [#allocation3], 0  ;;  %s103_s0 = inlined_call_operand.hbm [shape: f32[8,128], index: 0, kind: input, shape index: {}]   ;;  %s104_s1 = inlined_call_operand.hbm [shape: f32[8,128], index: 1, kind: output, shape index: {}]  }
   0x1   :  { %7 = vsyncpa [#allocation4], 0  ;;  %s85_s6 = smov [#allocation2]  }
   0x2   :  { %s14_s7 = sshll.u32 %s85_s6, 4  ;;  %s15_s7 = int_to_ptr.vmem [resolvable:$true] %s14_s7 }
   0x3   :  { %s49_s8 = scalar_lea.vmem %s15_s7, 128  ;;  %p54_p1 = scmp.lt.s32.totalorder %s15_s7, %s15_s7 }
   0x4   :  { %p50_p0 = scmp.ne.s32.totalorder %s15_s7, %s49_s8  ;;  %p55_p2 = scmp.lt.s32.totalorder %s49_s8, %s49_s8 }
   0x6   :  { %p56_p3 = por %p55_p2, %p54_p1 }
   0x8   :  { %p57_p4 = pnand %p56_p3, %p50_p0 }
   0xa   :  { %60 = shalt.err (!%p57_p4)
}
   0xb   :  { %17 = dma.hbm_to_vmem [thread:$0]  %s103_s0, 128, %s15_s7, [#allocation3]  }
   0xc   :  { %81 = dma.done.wait [#allocation3], 128  }
   0xd   :  { %82 = vsyncadd [#allocation3], 4294967168  ;;  %s86_s11 = smov [#allocation5]   ;;  %v21_v0 = vld [vmem:[#allocation2] sm:$0xff] }
   0xe   :  { %s30_s12 = sshll.u32 %s86_s11, 4  ;;  %v22_v1 = vadd.f32 1.0, %v21_v0  ;;  %s31_s12 = int_to_ptr.vmem [resolvable:$true] %s30_s12 }
   0xf   :  { %s61_s13 = scalar_lea.vmem %s31_s12, 128  ;;  %p66_p6 = scmp.lt.s32.totalorder %s31_s12, %s31_s12 }
  0x10   :  { %23 = vst [vmem:[#allocation5] sm:$0xff] %v22_v1  ;;  %p62_p5 = scmp.ne.s32.totalorder %s31_s12, %s61_s13  ;;  %p67_p7 = scmp.lt.s32.totalorder %s61_s13, %s61_s13 }
  0x12   :  { %p68_p8 = por %p67_p7, %p66_p6 }
  0x14   :  { %p69_p9 = pnand %p68_p8, %p62_p5 }
  0x16   :  { %72 = shalt.err (!%p69_p9)
}
  0x17   :  { %33 = dma.vmem_to_hbm [thread:$0]  %s31_s12, 128, %s104_s1, [#allocation4]  }
  0x18   :  { %83 = dma.done.wait [#allocation4], 128  }
  0x19   :  { %84 = vsyncadd [#allocation4], 4294967168 }
  0x1a   :  { %37 = vsyncpa [#allocation3], 1 }
  0x1b   :  { %38 = vsyncpa [#allocation4], 1 }

// kernel: tpu_custom_call.1
= control target key start
LH: loop header
LB: loop body
LE: loop exit
PB: predicated region body
PF: predicated region fallthrough
CT: control target
= control target key end

     0   :  { %s1927_s0 = inlined_call_operand.hbm [shape: f32[2,32,32], index: 0, kind: input, shape index: {}]   ;;  %s1928_s1 = inlined_call_operand.vmem [shape: f32[1,32], index: 1, kind: input, shape index: {}]   ;;  %s1929_s2 = inlined_call_operand.vmem [shape: f32[1,32], index: 2, kind: input, shape index: {}]   ;;  %s1930_s3 = inlined_call_operand.hbm [shape: bf16[32,32], index: 3, kind: input, shape index: {}]   ;;  %s1931_s4 = inlined_call_operand.hbm [shape: bf16[32,32], index: 4, kind: input, shape index: {}]   ;;  %s1932_s5 = inlined_call_operand.hbm [shape: bf16[32,32], index: 5, kind: input, shape index: {}]   ;;  %s1933_s6 = inlined_call_operand.vmem [shape: bf16[2,4,32,8], index: 6, kind: output, shape index: {0}]   ;;  %s1934_s7 = inlined_call_operand.vmem [shape: bf16[2,4,32,8], index: 7, kind: output, shape index: {1}]   ;;  %s1935_s8 = inlined_call_operand.vmem [shape: bf16[2,4,32,8], index: 8, kind: output, shape index: {2}]  }
   0x1   :  { %1940 = sst [smem:[#allocation18_spill]] %s1930_s3 }
   0x2   :  { %1941 = sst [smem:[#allocation19_spill]] %s1931_s4 }
   0x3   :  { %1942 = sst [smem:[#allocation20_spill]] %s1932_s5 }
   0x4   :  { %1943 = sst [smem:[#allocation21_spill]] %s1933_s6 }
   0x5   :  { %1944 = sst [smem:[#allocation22_spill]] %s1934_s7 }
   0x6   :  { %1945 = sst [smem:[#allocation23_spill]] %s1935_s8 }
   0x7   :  { %14 = vsyncpa [#allocation3], 0 }
   0x8   :  { %16 = vsyncpa [#allocation3 + $0x1], 0 }
   0x9   :  { %17 = vsyncpa [#allocation5], 0 }
   0xa   :  { %18 = vsyncpa [#allocation8], 0  ;;  %s1622_s27 = smov 0   ;;  %s1624_s28 = smov 0  }
   0xb   :  { %s1626_s29 = smov 0   ;;  %s1628_s30 = smov 0  }
   0xc   :  { %s1630_s9 = smov 0   ;;  %s1632_s10 = smov 0  }
   0xd   :  { %s1634_s11 = smov 0   ;;  %s1636_s12 = smov 0  }
   0xe LB: > { %1946 = sst [smem:[#allocation15_spill]] %s1546_s30  ;;  %s1154_s13 = sadd.s32 4294967295, %s1562_s12   ;;  %s1562_s12 = sphi %s1636_s12, %s24_s12   ;;  %s1558_s11 = sphi %s1634_s11, %s1978_s11   ;;  %s1554_s10 = sphi %s1632_s10, %s1977_s10   ;;  %s1550_s9 = sphi %s1630_s9, %s1976_s9   ;;  %s1546_s30 = sphi %s1628_s30, %s1975_s30   ;;  %s1542_s29 = sphi %s1626_s29, %s1974_s29   ;;  %s1538_s28 = sphi %s1624_s28, %s1973_s28   ;;  %s1534_s27 = sphi %s1622_s27, %s1972_s27  }
   0xf   : > { %1947 = sst [smem:[#allocation16_spill]] %s1550_s9  ;;  %p58_p0 = scmp.ne.s32.totalorder %s1538_s28, %s1534_s27 }
  0x10   : > { %p1662_p1 = scmp.eq.s32.totalorder %s1154_s13, 0  ;;  %p1666_p2 = scmp.eq.s32.totalorder %s1154_s13, 3 }
  0x11   : > { %p1156_p3 = scmp.ge.s32.totalorder %s1562_s12, 1  ;;  %p258_p4 = scmp.lt.s32.totalorder %s1562_s12, 5 }
  0x12   : > { %s1948_s14 = scalar_select %p1662_p1, 1, 0 }
  0x13   : > { %p1674_p5 = por %p1662_p1, %p58_p0  ;;  %p1678_p6 = pnand %p1156_p3, %p258_p4 }
  0x14   : > { %s1564_s18 = smov [#allocation4]   ;;  %s1565_s21 = smov [#allocation6]  }
  0x15   : > { %s1950_s16 = scalar_select %p1674_p5, 1, 0 }
  0x16   : > { %s276_s19 = sshll.u32 %s1564_s18, 4  ;;  %p1275_p7 = pneg %p1678_p6  ;;  %s277_s19 = int_to_ptr.vmem [resolvable:$true] %s276_s19 }
  0x17   : > { %s289_s22 = sshll.u32 %s1565_s21, 4  ;;  %s1393_s23 = scalar_lea.vmem %s277_s19, 256  ;;  %s290_s22 = int_to_ptr.vmem [resolvable:$true] %s289_s22 }
  0x18   : > { %p1686_p8 = pnand %p1275_p7, %p1662_p1  ;;  %p1394_p10 = scmp.ne.s32.totalorder %s277_s19, %s1393_s23 }
  0x19   : > { %p1401_p13 = scmp.lt.s32.totalorder %s277_s19, %s277_s19  ;;  %p1402_p0 = scmp.lt.s32.totalorder %s1393_s23, %s1393_s23 }
  0x1a   : > { %p1384_p9 = pneg %p1686_p8 }
  0x1b   : > { %p1403_p3 = por %p1402_p0, %p1401_p13 }
  0x1c   : > { %p1396_p11 = pnand %p1394_p10, %p1384_p9 }
  0x1e   : > { %p1397_p12 = pneg %p1396_p11 }
  0x20   : > { %p1404_p4 = pnand %p1403_p3, %p1397_p12 }
  0x22   : > { %1407 = shalt.err (!%p1404_p4)
}
  0x23   : > { %s1566_s24 = smov 64   ;;  %s1567_s25 = smov 4  }
  0x24   : > { %s1953_s3 = sld [smem:[#allocation18_spill]]  ;;  %s1419_s13 = scalar_lea.vmem %s290_s22, 256 }
  0x25   : > { %p1420_p7 = scmp.ne.s32.totalorder %s290_s22, %s1419_s13  ;;  %p1427_p1 = scmp.lt.s32.totalorder %s290_s22, %s290_s22 }
  0x26   : > { %p1428_p5 = scmp.lt.s32.totalorder %s1419_s13, %s1419_s13 }
  0x27   : > { %p1422_p10 = pnand %p1420_p7, %p1384_p9 }
  0x28   : > { %p1429_p13 = por %p1428_p5, %p1427_p1 }
  0x29   : > { %p1423_p11 = pneg %p1422_p10 }
  0x2a   : > { %1278 = dma.hbm_to_vmem [thread:$0]  (!%p1686_p8), %s1953_s3, 256, %s277_s19, [#allocation5], %s1566_s24, %s1566_s24, %s1567_s25  }
  0x2b   : > { %p1430_p12 = pnand %p1429_p13, %p1423_p11 }
  0x2d   : > { %1433 = shalt.err (!%p1430_p12)
}
  0x2e   : > { %s1954_s4 = sld [smem:[#allocation19_spill]]  ;;  %s1568_s23 = smov [#allocation7]  }
  0x2f   : > { %s302_s19 = sshll.u32 %s1568_s23, 4  ;;  %s303_s19 = int_to_ptr.vmem [resolvable:$true] %s302_s19 }
  0x30   : > { %s1445_s26 = scalar_lea.vmem %s303_s19, 256  ;;  %p1453_p7 = scmp.lt.s32.totalorder %s303_s19, %s303_s19 }
  0x31   : > { %p1446_p0 = scmp.ne.s32.totalorder %s303_s19, %s1445_s26  ;;  %p1454_p1 = scmp.lt.s32.totalorder %s1445_s26, %s1445_s26 }
  0x33   : > { %p1448_p3 = pnand %p1446_p0, %p1384_p9  ;;  %p1455_p5 = por %p1454_p1, %p1453_p7 }
  0x34   : > { %1281 = dma.hbm_to_vmem [thread:$0]  (!%p1686_p8), %s1954_s4, 256, %s290_s22, [#allocation5], %s1566_s24, %s1566_s24, %s1567_s25  }
  0x35   : > { %p1449_p4 = pneg %p1448_p3 }
  0x37   : > { %p1456_p10 = pnand %p1455_p5, %p1449_p4 }
  0x39   : > { %1459 = shalt.err (!%p1456_p10)
}
  0x3a   : > { %s1955_s5 = sld [smem:[#allocation20_spill]]  ;;  %s33_s22 = sadd.s32 1, %s1554_s10 }
  0x3b   : > { %s36_s18 = sadd.s32 1, %s1558_s11  ;;  %p34_p9 = scmp.ge.s32.totalorder %s33_s22, 2 }
  0x3c   : > { %s45_s20 = sadd.s32 1, %s1542_s29  ;;  %p52_p11 = scmp.ne.s32.totalorder %s1542_s29, %s1538_s28 }
  0x3d   : > { %p53_p13 = scmp.eq.s32.totalorder %s1562_s12, 0  ;;  %s1980_s22 = smov (%p34_p9, %s33_s22), 0 }
  0x3e   : > { %1956 = sst [smem:[#allocation17_spill]] %s1980_s22  ;;  %s1982_s18 = smov (!%p34_p9, %s36_s18), %s1558_s11 }
  0x3f   : > { %s41_s21 = ssub.s32 %s1554_s10, %s1980_s22  ;;  %p1727_p12 = por %p53_p13, %p52_p11 }
  0x40   : > { %1284 = dma.hbm_to_vmem [thread:$0]  (!%p1686_p8), %s1955_s5, 256, %s303_s19, [#allocation8], %s1566_s24, %s1566_s24, %s1567_s25  }
  0x41   : > { %p38_p8 = scmp.ge.s32.totalorder %s1982_s18, 2  ;;  %p1733_p0 = por %p1666_p2, %p52_p11 }
  0x42   : > { %p1292_p3 = scmp.lt.s32.totalorder %s1562_s12, 4  ;;  %s316_s25 = sand.u32 1, %s1542_s29  }
  0x43   : > { %s1984_s18 = smov (%p38_p8, %s1982_s18), 0  ;;  %s1161_s19 = sshll.u32 %s316_s25, 4 }
  0x44   : > { %s40_s26 = ssub.s32 %s1558_s11, %s1984_s18  ;;  %s1162_s13 = sshll.u32 %s1554_s10, 1 }
  0x45   : > { %s42_s27 = sor.u32 %s41_s21, %s40_s26  ;;  %s1163_s3 = sshll.u32 %s1558_s11, 2 }
  0x46   : > { %p43_p4 = scmp.eq.s32.totalorder %s42_s27, 0  ;;  %s326_s4 = sadd.s32 %s1163_s3, %s1162_s13 }
  0x47   : > { %s320_s5 = scalar_lea.vmem [#allocation2], %s1161_s19  ;;  %s1164_s8 = sshll.u32 %s326_s4, 7 }
  0x48   : > { %s329_s15 = sshll.u32 %s320_s5, 4  ;;  %s328_s9 = scalar_lea.hbm %s1927_s0, %s1164_s8  ;;  %s330_s15 = int_to_ptr.vmem [resolvable:$true] %s329_s15 }
  0x49   : > { %s1746_s22 = scalar_select %p43_p4, %s1542_s29, %s45_s20  }
  0x4a   : > { %p1755_p2 = pnand %p1292_p3, %p1727_p12  ;;  %s317_s21 = scalar_lea.sflag [#allocation3], %s316_s25 }
  0x4b   : > { %s1473_s3 = scalar_lea.vmem %s330_s15, 256  ;;  %s1569_s4 = smov [#allocation2]  }
  0x4c   : > { %p1462_p7 = pneg %p1755_p2  ;;  %p1474_p1 = scmp.ne.s32.totalorder %s330_s15, %s1473_s3 }
  0x4d   : > { %s1478_s5 = sshll.u32 %s1569_s4, 4  ;;  %s1479_s5 = int_to_ptr.vmem [resolvable:$false] %s1478_s5 }
  0x4e   : > { %p1476_p5 = pnand %p1474_p1, %p1462_p7  ;;  %s1480_s20 = scalar_lea.vmem %s1479_s5, 512 }
  0x4f   : > { %p1481_p9 = scmp.lt.s32.totalorder %s330_s15, %s1479_s5  ;;  %p1482_p11 = scmp.lt.s32.totalorder %s1480_s20, %s1473_s3 }
  0x50   : > { %p1477_p10 = pneg %p1476_p5 }
  0x51   : > { %p1483_p13 = por %p1482_p11, %p1481_p9 }
  0x53   : > { %p1484_p8 = pnand %p1483_p13, %p1477_p10 }
  0x55   : > { %1487 = shalt.err (!%p1484_p8)
}
  0x56   : > { %s1570_s6 = smov 128   ;;  %s1571_s7 = smov 8  }
  0x57   : > { %1288 = dma.hbm_to_vmem [thread:$0]  (!%p1755_p2), %s328_s9, 256, %s330_s15, %s317_s21, %s1570_s6, %s1570_s6, %s1571_s7  }
  0x58   : > { %341 = sbr.rel (%p1678_p6) target bundleno = 787 (0x313), region = 44  ;;  %s1766_s8 = sand.u32 (!%p1678_p6), 1, %s1538_s28  }
  0x59   : > { %s1166_s23 = sshll.u32 (!%p1678_p6), %s1766_s8, 4  ;;  %s344_s25 = scalar_lea.sflag (!%p1678_p6), [#allocation3], %s1766_s8 }
  0x5a   : > { %s347_s19 = scalar_lea.vmem (!%p1678_p6), [#allocation2], %s1166_s23  ;;  %p1960_p12 = scmp.ne.s32.totalorder (!%p1678_p6), %s1950_s16, 0 }
  0x5d   : > { %1521 = dma.done.wait (%p1960_p12), %s344_s25, 256  }
  0x5e   : > { %1523 = vsyncadd (%p1960_p12), %s344_s25, 4294967040  ;;  %p1961_p3 = scmp.ne.s32.totalorder %s1948_s14, 0 }
  0x60   : > { %1525 = dma.done.wait (%p1961_p3), [#allocation5], 512  }
  0x61   : > { %1527 = vsyncadd (%p1961_p3), [#allocation5], 4294966784 }
  0x62   : > { %1529 = dma.done.wait (%p1961_p3), [#allocation8], 256  }
  0x63   : > { %1531 = vsyncadd (%p1961_p3), [#allocation8], 4294967040  ;;  %vm406_vm0 = vcmask 261120   ;;  %v404_v0 = vld [vmem:[%s347_s19] sm:$0xff]  ;;  %v405_v1 = vld [vmem:[%s347_s19 + $0x8] sm:$0xff]  ;;  %v1572_v16 = vmov 0.0  }
  0x64   : > { %v407_v2 = vsel %vm406_vm0, %v404_v0, 0.0  ;;  %v410_v3 = vsel %vm406_vm0, %v405_v1, 0.0  ;;  %v1372_v14 = vld [vmem:[#allocation4 + $0x8] sm:$0xff]   ;;  %v1373_v15 = vld [vmem:[#allocation6 + $0x8] sm:$0xff]   ;;  %1237 = vmatprep.subr.bf16.mxu0 %v1572_v16  ;;  %1245 = vmatprep.subr.bf16.mxu1 %v1572_v16  ;;  %v1374_v17 = vld [vmem:[#allocation4] sm:$0xff]   ;;  %vm1573_vm1 = vmmov 0  }
  0x65   : > { %408 = vadd.xlane.f32.xlu0 %v407_v2  ;;  %1238 = vmatpush3.bf16.msra.mxu0 %v1372_v14  ;;  %v1375_v18 = vld [vmem:[#allocation6] sm:$0xff]   ;;  %v1173_v27 = vld [vmem:[%s1928_s1] ss:$0 sm:$0xff]  ;;  %v1376_v35 = vld [vmem:[#allocation7 + $0x8] sm:$0xff]   ;;  %s1799_s17 = sshll.u32 %s1766_s8, 5  ;;  %vm639_vm2 = vcmask 60416  }
  0x66   : > { %1246 = vmatpush3.bf16.msra.mxu1 %v1373_v15  ;;  %1239 = vmatprep.subr.bf16.mxu0 %v1572_v16  ;;  %v1174_v31 = vld [vmem:[%s1929_s2] ss:$0 sm:$0xff]  ;;  %s1802_s26 = scalar_lea.vmem [#allocation10], %s1799_s17  ;;  %s1574_s27 = smov 112  }
  0x67   : > { %1247 = vmatprep.subr.bf16.mxu1 %v1572_v16  ;;  %1241 = vmatprep.mubr.msk.bf16.mxu0 %vm1573_vm1, %v1572_v16  ;;  %v1377_v37 = vld [vmem:[#allocation7] sm:$0xff]   ;;  %s1575_s13 = smov 120   ;;  %s1809_s15 = scalar_lea.vmem [#allocation9], %s1799_s17 }
  0x68   : > { %1249 = vmatprep.mubr.msk.bf16.mxu1 %vm1573_vm1, %v1572_v16  ;;  %s1576_s21 = smov 104   ;;  %s1819_s3 = scalar_lea.vmem [#allocation11], %s1799_s17 }
  0x69   : > { %411 = vadd.xlane.f32.xlu0 %v410_v3  ;;  %1240 = vmatpush3.bf16.msra.mxu0 %v1374_v17  ;;  %s1962_s4 = sld [smem:[#allocation15_spill]] (%p1733_p0) }
  0x6a   : > { %1248 = vmatpush3.bf16.msra.mxu1 %v1375_v18  ;;  %1253 = vmatprep.subr.bf16.mxu0 %v1572_v16  ;;  %s1963_s5 = sld [smem:[#allocation16_spill]] (%p1733_p0) }
  0x6b   : > { %s1964_s19 = sld [smem:[#allocation21_spill]] (%p1733_p0) }
  0x6f   : > { %s1211_s20 = sshll.u32 (%p1733_p0), %s1962_s4, 1 }
  0x70   : > { %s1212_s6 = sshll.u32 (%p1733_p0), %s1963_s5, 4 }
  0x71   : > { %s758_s7 = sadd.s32 (%p1733_p0), %s1212_s6, %s1211_s20 }
  0x72   : > { %s1213_s8 = sshll.u32 (%p1733_p0), %s758_s7, 2 }
  0x73   : > { %s760_s30 = scalar_lea.vmem (%p1733_p0), %s1964_s19, %s1213_s8 }
  0xee   : > { %v409_v4 = vpop.xlane.xlu0 %408 }
  0xef   : > { %v414_v5 = vmul.f32 0.03125, %v409_v4 }
  0xf1   : > { %v416_v6 = vsub.f32 %v404_v0, %v414_v5 }
  0xf2   : > { %v412_v7 = vpop.xlane.xlu0 %411 }
  0xf3   : > { %v415_v8 = vmul.f32 0.03125, %v412_v7  ;;  %v418_v9 = vmul.f32 %v416_v6, %v416_v6 }
  0xf5   : > { %v417_v10 = vsub.f32 %v405_v1, %v415_v8  ;;  %v420_v11 = vsel %vm406_vm0, %v418_v9, 0.0 }
  0xf6   : > { %421 = vadd.xlane.f32.xlu1 %v420_v11 }
  0xf7   : > { %v419_v12 = vmul.f32 %v417_v10, %v417_v10 }
  0xf9   : > { %v423_v13 = vsel %vm406_vm0, %v419_v12, 0.0 }
  0xfa   : > { %424 = vadd.xlane.f32.xlu1 %v423_v13 }
 0x17f   : > { %v422_v19 = vpop.xlane.xlu1 %421 }
 0x180   : > { %v426_v20 = vmul.f32 0.03125, %v422_v19 }
 0x182   : > { %v428_v21 = vadd.f32 1e-05, %v426_v20 }
 0x183   : > { %v425_v22 = vpop.xlane.xlu1 %424 }
 0x184   : > { %1378 = vrsqrt.f32 %v428_v21  ;;  %v427_v23 = vmul.f32 0.03125, %v425_v22 }
 0x186   : > { %v429_v24 = vadd.f32 1e-05, %v427_v23 }
 0x188   : > { %1380 = vrsqrt.f32 %v429_v24 }
 0x191   : > { %v1379_v25 = vpop.eup %1378 }
 0x192   : > { %v432_v26 = vmul.f32 %v1379_v25, %v416_v6 }
 0x194   : > { %v441_v30 = vmul.f32 %v1173_v27, %v432_v26 }
 0x195   : > { %v1381_v28 = vpop.eup %1380 }
 0x196   : > { %v433_v29 = vmul.f32 %v1381_v28, %v417_v10  ;;  %v450_v33 = vadd.f32 %v1174_v31, %v441_v30 }
 0x198   : > { %v442_v32 = vmul.f32 %v1173_v27, %v433_v29 }
 0x19a   : > { %v451_v34 = vadd.f32 %v1174_v31, %v442_v32 }
 0x19c   : > { %v452_v36 = vpack.c.bf16 %v451_v34, %v450_v33 }
 0x19e   : > { %1242 = vmatmul.mubr.msk.bf16.vlgmr.msra.gmra.mxu0 %vm406_vm0, %v452_v36  ;;  %1250 = vmatmul.mubr.msk.bf16.vlgmr.msra.gmra.mxu1 %vm406_vm0, %v452_v36 }
 0x19f   : > { %1254 = vmatpush3.bf16.msra.mxu0 %v1376_v35  ;;  %1257 = vmatprep.mubr.msk.bf16.mxu0 %vm1573_vm1, %v1572_v16 }
 0x1a0   : > { %1255 = vmatprep.subr.bf16.mxu0 %v1572_v16 }
 0x1a3   : > { %1256 = vmatpush3.bf16.msra.mxu0 %v1377_v37 }
 0x1a6   : > { %1258 = vmatmul.mubr.msk.bf16.vlgmr.msra.gmra.mxu0 %vm406_vm0, %v452_v36 }
 0x25e   : > { %v506_v38 = vpop.f32.mrf.mxu0  ;;  %v566_v39 = vpop.f32.mrf.mxu1 }
 0x25f   : > { %v513_v40 = vmul.f32 0.35355338, %v506_v38  ;;  %v1224_v41 = vpack.c.bf16 %v566_v39, %v566_v39 }
 0x260   : > { %v1243_v42 = vpop.f32.mrf.mxu0  ;;  %v1251_v43 = vpop.f32.mrf.mxu1 }
 0x261   : > { %v1222_v44 = vpack.c.bf16 %v513_v40, %v513_v40  ;;  %649 = vst.msk [vmem:[%s1802_s26] sm:$0xf] %vm639_vm2, %v1224_v41  ;;  %696 = vrot.lane.b32.xlu0 %v1224_v41, %s1574_s27  ;;  %669 = vrot.lane.b32.xlu1 %v1224_v41, %s1575_s13 }
 0x262   : > { %v509_v45 = vpop.f32.mrf.mxu0  ;;  %v569_v46 = vpop.f32.mrf.mxu1 }
 0x263   : > { %640 = vst.msk [vmem:[%s1809_s15] sm:$0xf] %vm639_vm2, %v1222_v44  ;;  %v514_v47 = vmul.f32 0.35355338, %v509_v45  ;;  %v1225_v48 = vpack.c.bf16 %v569_v46, %v569_v46 }
 0x264   : > { %v1244_v49 = vpop.f32.mrf.mxu0  ;;  %v1252_v50 = vpop.f32.mrf.mxu1 }
 0x265   : > { %v1223_v51 = vpack.c.bf16 %v514_v47, %v514_v47  ;;  %650 = vst.msk [vmem:[%s1802_s26 + $0x4] sm:$0xf] %vm639_vm2, %v1225_v48  ;;  %723 = vrot.lane.b32.xlu0 %v1224_v41, %s1576_s21  ;;  %671 = vrot.lane.b32.xlu1 %v1225_v48, %s1575_s13 }
 0x266   : > { %v624_v52 = vpop.f32.mrf.mxu0 }
 0x267   : > { %641 = vst.msk [vmem:[%s1809_s15 + $0x4] sm:$0xf] %vm639_vm2, %v1223_v51  ;;  %v1226_v53 = vpack.c.bf16 %v624_v52, %v624_v52 }
 0x268   : > { %v1259_v54 = vpop.f32.mrf.mxu0 }
 0x269   : > { %658 = vst.msk [vmem:[%s1819_s3] sm:$0xf] %vm639_vm2, %v1226_v53  ;;  %698 = vrot.lane.b32.xlu1 %v1225_v48, %s1574_s27  ;;  %660 = vrot.lane.b32.xlu0 %v1222_v44, %s1575_s13 }
 0x26a   : > { %v627_v55 = vpop.f32.mrf.mxu0 }
 0x26b   : > { %v1227_v56 = vpack.c.bf16 %v627_v55, %v627_v55 }
 0x26c   : > { %v1260_v57 = vpop.f32.mrf.mxu0 }
 0x26d   : > { %659 = vst.msk [vmem:[%s1819_s3 + $0x4] sm:$0xf] %vm639_vm2, %v1227_v56  ;;  %725 = vrot.lane.b32.xlu1 %v1225_v48, %s1576_s21  ;;  %687 = vrot.lane.b32.xlu0 %v1222_v44, %s1574_s27 }
 0x26e   : > { %v777_v12 = vld [vmem:[%s1809_s15] sm:$0xff] (%p1733_p0)  }
 0x26f   : > { %778 = vst [vmem:[%s760_s30] sm:$0xff] (%p1733_p0), %v777_v12  }
 0x271   : > { %714 = vrot.lane.b32.xlu0 %v1222_v44, %s1576_s21  ;;  %662 = vrot.lane.b32.xlu1 %v1223_v51, %s1575_s13 }
 0x275   : > { %689 = vrot.lane.b32.xlu1 %v1223_v51, %s1574_s27  ;;  %678 = vrot.lane.b32.xlu0 %v1226_v53, %s1575_s13 }
 0x279   : > { %716 = vrot.lane.b32.xlu1 %v1223_v51, %s1576_s21  ;;  %705 = vrot.lane.b32.xlu0 %v1226_v53, %s1574_s27 }
 0x27d   : > { %732 = vrot.lane.b32.xlu0 %v1226_v53, %s1576_s21  ;;  %680 = vrot.lane.b32.xlu1 %v1227_v56, %s1575_s13 }
 0x281   : > { %707 = vrot.lane.b32.xlu1 %v1227_v56, %s1574_s27 }
 0x285   : > { %734 = vrot.lane.b32.xlu1 %v1227_v56, %s1576_s21 }
 0x2d3   : > { %v697_v58 = vpop.permute.xlu0 %696  ;;  %v670_v59 = vpop.permute.xlu1 %669 }
 0x2d4   : > { %1198 = vst.msk [vmem:[%s1802_s26 + $0x10] sm:$0xf] %vm639_vm2, %v697_v58  ;;  %1192 = vst.msk [vmem:[%s1802_s26 + $0x8] sm:$0xf] %vm639_vm2, %v670_v59 }
 0x2d7   : > { %v724_v60 = vpop.permute.xlu0 %723  ;;  %v672_v61 = vpop.permute.xlu1 %671 }
 0x2d8   : > { %1204 = vst.msk [vmem:[%s1802_s26 + $0x18] sm:$0xf] %vm639_vm2, %v724_v60  ;;  %1193 = vst.msk [vmem:[%s1802_s26 + $0xc] sm:$0xf] %vm639_vm2, %v672_v61 }
 0x2db   : > { %v699_v62 = vpop.permute.xlu1 %698  ;;  %v661_v63 = vpop.permute.xlu0 %660 }
 0x2dc   : > { %1199 = vst.msk [vmem:[%s1802_s26 + $0x14] sm:$0xf] %vm639_vm2, %v699_v62  ;;  %1190 = vst.msk [vmem:[%s1809_s15 + $0x8] sm:$0xf] %vm639_vm2, %v661_v63 }
 0x2df   : > { %v726_v0 = vpop.permute.xlu1 %725  ;;  %v688_v1 = vpop.permute.xlu0 %687 }
 0x2e0   : > { %1205 = vst.msk [vmem:[%s1802_s26 + $0x1c] sm:$0xf] %vm639_vm2, %v726_v0  ;;  %1196 = vst.msk [vmem:[%s1809_s15 + $0x10] sm:$0xf] %vm639_vm2, %v688_v1 }
 0x2e3   : > { %v715_v2 = vpop.permute.xlu0 %714  ;;  %v663_v3 = vpop.permute.xlu1 %662 }
 0x2e4   : > { %1202 = vst.msk [vmem:[%s1809_s15 + $0x18] sm:$0xf] %vm639_vm2, %v715_v2  ;;  %1191 = vst.msk [vmem:[%s1809_s15 + $0xc] sm:$0xf] %vm639_vm2, %v663_v3 }
 0x2e7   : > { %v690_v4 = vpop.permute.xlu1 %689  ;;  %v679_v5 = vpop.permute.xlu0 %678 }
 0x2e8   : > { %1197 = vst.msk [vmem:[%s1809_s15 + $0x14] sm:$0xf] %vm639_vm2, %v690_v4  ;;  %1194 = vst.msk [vmem:[%s1819_s3 + $0x8] sm:$0xf] %vm639_vm2, %v679_v5 }
 0x2eb   : > { %v717_v6 = vpop.permute.xlu1 %716  ;;  %v706_v7 = vpop.permute.xlu0 %705  ;;  %v781_v13 = vld [vmem:[%s1809_s15 + $0x8] sm:$0xff] (%p1733_p0)  }
 0x2ec   : > { %1203 = vst.msk [vmem:[%s1809_s15 + $0x1c] sm:$0xf] %vm639_vm2, %v717_v6  ;;  %1200 = vst.msk [vmem:[%s1819_s3 + $0x10] sm:$0xf] %vm639_vm2, %v706_v7 }
 0x2ed   : > { %782 = vst [vmem:[%s760_s30 + $0x10] sm:$0xff] (%p1733_p0), %v781_v13  }
 0x2ef   : > { %v733_v8 = vpop.permute.xlu0 %732  ;;  %v681_v9 = vpop.permute.xlu1 %680  ;;  %v785_v14 = vld [vmem:[%s1809_s15 + $0x10] sm:$0xff] (%p1733_p0)  }
 0x2f0   : > { %1206 = vst.msk [vmem:[%s1819_s3 + $0x18] sm:$0xf] %vm639_vm2, %v733_v8  ;;  %1195 = vst.msk [vmem:[%s1819_s3 + $0xc] sm:$0xf] %vm639_vm2, %v681_v9 }
 0x2f1   : > { %786 = vst [vmem:[%s760_s30 + $0x20] sm:$0xff] (%p1733_p0), %v785_v14  }
 0x2f3   : > { %v708_v10 = vpop.permute.xlu1 %707  ;;  %v789_v15 = vld [vmem:[%s1809_s15 + $0x18] sm:$0xff] (%p1733_p0)  }
 0x2f4   : > { %1201 = vst.msk [vmem:[%s1819_s3 + $0x14] sm:$0xf] %vm639_vm2, %v708_v10  ;;  %755 = sbr.rel (!%p1733_p0) target bundleno = 761 (0x2f9), region = 64  ;;  %790 = vst [vmem:[%s760_s30 + $0x30] sm:$0xff] (%p1733_p0), %v789_v15  }
 0x2f7   : > { %v735_v11 = vpop.permute.xlu1 %734 }
 0x2f8   : > { %1207 = vst.msk [vmem:[%s1819_s3 + $0x1c] sm:$0xf] %vm639_vm2, %v735_v11 }
 0x2f9 PF: > { %832 = sbr.rel (!%p1733_p0) target bundleno = 774 (0x306), region = 105  ;;  %s1965_s9 = sld [smem:[#allocation15_spill]] (%p1733_p0)  ;;  %v854_v16 = vld [vmem:[%s1802_s26] sm:$0xff] (%p1733_p0)   ;;  %v858_v17 = vld [vmem:[%s1802_s26 + $0x8] sm:$0xff] (%p1733_p0)   ;;  %v862_v18 = vld [vmem:[%s1802_s26 + $0x10] sm:$0xff] (%p1733_p0)  }
 0x2fa   : > { %s1966_s14 = sld [smem:[#allocation16_spill]] (%p1733_p0)  ;;  %v866_v19 = vld [vmem:[%s1802_s26 + $0x18] sm:$0xff] (%p1733_p0)  }
 0x2fb   : > { %s1967_s4 = sld [smem:[#allocation22_spill]] (%p1733_p0) }
 0x2ff   : > { %s1214_s16 = sshll.u32 %s1965_s9, 1 }
 0x300   : > { %s1215_s17 = sshll.u32 %s1966_s14, 4 }
 0x301   : > { %s835_s27 = sadd.s32 %s1215_s17, %s1214_s16 }
 0x302   : > { %s1216_s13 = sshll.u32 %s835_s27, 2 }
 0x303   : > { %s837_s5 = scalar_lea.vmem %s1967_s4, %s1216_s13 }
 0x304   : > { %855 = vst [vmem:[%s837_s5] sm:$0xff] %v854_v16   ;;  %859 = vst [vmem:[%s837_s5 + $0x10] sm:$0xff] %v858_v17  }
 0x305   : > { %863 = vst [vmem:[%s837_s5 + $0x20] sm:$0xff] %v862_v18   ;;  %867 = vst [vmem:[%s837_s5 + $0x30] sm:$0xff] %v866_v19  }
 0x306 PF: > { %909 = sbr.rel (!%p1733_p0) target bundleno = 787 (0x313), region = 146  ;;  %s1968_s20 = sld [smem:[#allocation15_spill]] (%p1733_p0)  ;;  %v931_v20 = vld [vmem:[%s1819_s3] sm:$0xff] (%p1733_p0)   ;;  %v935_v21 = vld [vmem:[%s1819_s3 + $0x8] sm:$0xff] (%p1733_p0)   ;;  %v939_v22 = vld [vmem:[%s1819_s3 + $0x10] sm:$0xff] (%p1733_p0)  }
 0x307   : > { %s1969_s6 = sld [smem:[#allocation16_spill]] (%p1733_p0)  ;;  %v943_v23 = vld [vmem:[%s1819_s3 + $0x18] sm:$0xff] (%p1733_p0)  }
 0x308   : > { %s1970_s30 = sld [smem:[#allocation23_spill]] (%p1733_p0) }
 0x30c   : > { %s1217_s26 = sshll.u32 %s1968_s20, 1 }
 0x30d   : > { %s1218_s7 = sshll.u32 %s1969_s6, 4 }
 0x30e   : > { %s912_s8 = sadd.s32 %s1218_s7, %s1217_s26 }
 0x30f   : > { %s1219_s23 = sshll.u32 %s912_s8, 2 }
 0x310   : > { %s914_s9 = scalar_lea.vmem %s1970_s30, %s1219_s23 }
 0x311   : > { %932 = vst [vmem:[%s914_s9] sm:$0xff] %v931_v20   ;;  %936 = vst [vmem:[%s914_s9 + $0x10] sm:$0xff] %v935_v21  }
 0x312   : > { %940 = vst [vmem:[%s914_s9 + $0x20] sm:$0xff] %v939_v22   ;;  %944 = vst [vmem:[%s914_s9 + $0x30] sm:$0xff] %v943_v23  }
 0x313 PF: > { %s24_s12 = sadd.s32 1, %s1562_s12   ;;  %s1971_s24 = sld [smem:[#allocation17_spill]] }
 0x314   : > { %p21_p6 = scmp.ge.s32.totalorder %s24_s12, 6   ;;  %s1972_s27 = smov %s1538_s28 }
 0x315   : > { %s1973_s28 = smov %s1542_s29  ;;  %s1974_s29 = smov %s1746_s22 }
 0x316   : > { %s1975_s30 = smov %s1554_s10  ;;  %s1976_s9 = smov %s1558_s11 }
 0x317   : > { %s1978_s11 = smov %s1984_s18  ;;  %23 = sbr.rel (!%p21_p6) target bundleno = 14 (0xe), region = 252 }
 0x319   : > { %s1977_s10 = smov %s1971_s24 }
 0x31c   :  { %1010 = vsyncpa [#allocation3], 1 }
 0x31d   :  { %1012 = vsyncpa [#allocation3 + $0x1], 1 }
 0x31e   :  { %1013 = vsyncpa [#allocation5], 1 }
 0x31f   :  { %1014 = vsyncpa [#allocation8], 1 }

</bundles_post_ra>
